<compile_context>
chip_gen: v5e
topology: v5e:2x2
jax: 0.10.0
libtpu: 0.0.40
codegen_flags: <defaults>
</compile_context>

<pallas_src>
import jax
import jax.numpy as jnp
from jax.experimental import pallas as pl
from jax.experimental.pallas import tpu as pltpu


_TB_MAX = 1024  # max batch-tile width (lanes) per grid step


def _round_up(n: int, m: int) -> int:
    return (n + m - 1) // m * m


# ----------------------------- Pallas kernel --------------------------------
def _make_kernel(num_linears: int):
    """Fused MLP kernel for `num_linears` (= num_layers + 1) Linear layers.

    refs = (x_ref, w0, b0, w1, b1, ..., o_ref), all in the transposed
    (features, batch_tile) layout.
    """

    def kernel(*refs):
        x_ref = refs[0]
        o_ref = refs[-1]
        wb = refs[1:-1]                                    # w0,b0,...,wL,bL

        # bf16 at the HBM boundary, f32 for every compute step.
        h = x_ref[...].astype(jnp.float32)                 # (F_in, TB)

        # First Linear: (H, F_in) @ (F_in, TB) -> (H, TB)
        h = jnp.dot(wb[0][...], h, preferred_element_type=jnp.float32) + wb[1][...]

        # (ReLU, Linear(H, H)) * (num_layers - 1)
        for l in range(1, num_linears - 1):
            h = jnp.maximum(h, 0.0)
            h = jnp.dot(wb[2 * l][...], h,
                        preferred_element_type=jnp.float32) + wb[2 * l + 1][...]

        # Tanh -> final Linear: (input_dim, H) @ (H, TB) -> (input_dim, TB)
        h = jnp.tanh(h)
        h = jnp.dot(wb[-2][...], h, preferred_element_type=jnp.float32) + wb[-1][...]

        o_ref[...] = h.astype(o_ref.dtype)                 # lane-dense store

    return kernel


# ------------------------------ JAX wrapper ----------------------------------
@jax.jit
def ode_field_forward(h, params):
    """Mirrors _ODEField.forward: net(h.squeeze()).

    params = (w0, b0, w1, b1, ..., wL, bL) with w_l of shape (out, in) and
    b_l of shape (out, 1).

    NOTE: for tiny batches (< ~128 ODE states) this is launch-overhead bound;
    fold more states/timesteps into one call (or use the plain-JAX reference)
    rather than tuning the kernel further.
    """
    # h.squeeze(), but never collapse the batch dimension away (batch == 1).
    x = jnp.squeeze(h)
    squeeze_out = x.ndim == 1
    if squeeze_out:
        x = x[None, :]
    assert x.ndim == 2, "expected (batch, in_features) after squeeze"
    x = x.astype(jnp.float32)

    ws = params[0::2]
    bs = params[1::2]
    num_linears = len(ws)
    in_features = ws[0].shape[1]
    input_dim = ws[-1].shape[0]
    batch = x.shape[0]

    # Batch tile: multiple of 128 lanes, capped at _TB_MAX; pad batch up.
    tb = min(_TB_MAX, _round_up(batch, 128))
    b_pad = _round_up(batch, tb)
    grid_b = b_pad // tb

    # Lane-dense transposed layout + bf16 streaming of the activations.
    xt = x.T.astype(jnp.bfloat16)                          # (F_in, B)
    xt = jnp.pad(xt, ((0, 0), (0, b_pad - batch)))         # (F_in, B_pad)

    # x/out tiles ride the grid; weights & biases are VMEM-resident
    # (constant index_map -> no re-DMA across grid steps).
    in_specs = [pl.BlockSpec((in_features, tb), lambda i: (0, i))]
    operands = [xt]
    for w, b in zip(ws, bs):
        in_specs.append(pl.BlockSpec(w.shape, lambda i: (0, 0)))
        in_specs.append(pl.BlockSpec(b.shape, lambda i: (0, 0)))
        operands += [w, b]

    out_t = pl.pallas_call(
        _make_kernel(num_linears),
        out_shape=jax.ShapeDtypeStruct((input_dim, b_pad), jnp.bfloat16),
        grid=(grid_b,),
        in_specs=in_specs,
        out_specs=pl.BlockSpec((input_dim, tb), lambda i: (0, i)),
        compiler_params=pltpu.CompilerParams(
            dimension_semantics=("parallel",),             # 2 TCs on v7x
        ),
    )(*operands)

    out = out_t[:, :batch].T.astype(jnp.float32)           # back to (B, input_dim)
    return out[0] if squeeze_out else out


# ----------------------- deterministic parameter init ------------------------
def init_params(key, in_features, hidden_dim, input_dim, num_layers):
    """PyTorch-Linear-style uniform init; weights (out, in), biases (out, 1)."""
    fans = ([(in_features, hidden_dim)]
            + [(hidden_dim, hidden_dim)] * (num_layers - 1)
            + [(hidden_dim, input_dim)])
    keys = jax.random.split(key, 2 * len(fans))
    params = []
    for idx, (fan_in, fan_out) in enumerate(fans):
        kw, kb = keys[2 * idx], keys[2 * idx + 1]
        bound = 1.0 / float(fan_in) ** 0.5
        w = jax.random.uniform(kw, (fan_out, fan_in), jnp.float32, -bound, bound)
        b = jax.random.uniform(kb, (fan_out, 1), jnp.float32, -bound, bound)
        params += [w, b]
    return tuple(params)


# ------------------------------ reference check ------------------------------
def ode_field_reference(h, params):
    """Plain-JAX reference of the same MLP (for sanity checking)."""
    x = jnp.squeeze(h)
    if x.ndim == 1:
        x = x[None, :]
    x = x.astype(jnp.float32)
    ws = params[0::2]
    bs = params[1::2]
    n = len(ws)
    y = x @ ws[0].T + bs[0][:, 0]
    for l in range(1, n - 1):
        y = jnp.maximum(y, 0.0)
        y = y @ ws[l].T + bs[l][:, 0]
    y = jnp.tanh(y)
    y = y @ ws[-1].T + bs[-1][:, 0]
    return y


if __name__ == "__main__":
    # Module hyperparameters (small, consistent with __init__):
    #   input_dim=4, setup={'dim': 3}  -> in_features = 4 + 3 + 1 = 8
    #   num_layers=2, hidden_dim=32
    input_dim = 4
    setup = {"dim": 3}
    num_layers = 2
    hidden_dim = 32
    in_features = input_dim + setup["dim"] + 1

    key = jax.random.PRNGKey(0)
    k_param, k_input = jax.random.split(key)

    params = init_params(k_param, in_features, hidden_dim, input_dim, num_layers)

    # h as it arrives from an ODE solver: (batch, 1, in_features); forward
    # squeezes it to (batch, in_features).
    batch = 8
    h = jax.random.normal(k_input, (batch, 1, in_features), dtype=jnp.float32)

    out = ode_field_forward(h, params)
    out = jax.block_until_ready(out)

    # Kernel streams x and the output as bf16; compare against an f32
    # reference fed the same bf16-rounded inputs with a bf16-level tolerance.
    h_bf = h.astype(jnp.bfloat16).astype(jnp.float32)
    ref = ode_field_reference(h_bf, params)

    assert out.shape == (batch, input_dim), out.shape
    assert jnp.allclose(out, ref, atol=2e-2, rtol=2e-2), "mismatch vs reference"

    print("KERNEL_OK")
</pallas_src>

<mosaic_0001>
module attributes {stable_mosaic.version = 11 : i64} {
  func.func @kernel(%arg0: i32, %arg1: memref<8x128xbf16, #tpu.memory_space<vmem>>, %arg2: memref<32x8xf32, #tpu.memory_space<vmem>>, %arg3: memref<32x1xf32, #tpu.memory_space<vmem>>, %arg4: memref<32x32xf32, #tpu.memory_space<vmem>>, %arg5: memref<32x1xf32, #tpu.memory_space<vmem>>, %arg6: memref<4x32xf32, #tpu.memory_space<vmem>>, %arg7: memref<4x1xf32, #tpu.memory_space<vmem>>, %arg8: memref<4x128xbf16, #tpu.memory_space<vmem>>) attributes {dimension_semantics = [#tpu.dimension_semantics<parallel>], iteration_bounds = array<i64: 1>, scalar_prefetch = 0 : i64, scratch_operands = 0 : i64, tpu.core_type = #tpu.core_type<tc>, window_params = [{transform_indices = @transform_0, window_bounds = array<i64: 8, 128>}, {pipeline_mode = #tpu.pipeline_mode<synchronous>, transform_indices = @transform_1, window_bounds = array<i64: 32, 8>}, {pipeline_mode = #tpu.pipeline_mode<synchronous>, transform_indices = @transform_2, window_bounds = array<i64: 32, 1>}, {pipeline_mode = #tpu.pipeline_mode<synchronous>, transform_indices = @transform_3, window_bounds = array<i64: 32, 32>}, {pipeline_mode = #tpu.pipeline_mode<synchronous>, transform_indices = @transform_4, window_bounds = array<i64: 32, 1>}, {pipeline_mode = #tpu.pipeline_mode<synchronous>, transform_indices = @transform_5, window_bounds = array<i64: 4, 32>}, {pipeline_mode = #tpu.pipeline_mode<synchronous>, transform_indices = @transform_6, window_bounds = array<i64: 4, 1>}, {transform_indices = @transform_7, window_bounds = array<i64: 4, 128>}]} {
    %c0 = arith.constant 0 : index
    %c0_0 = arith.constant 0 : index
    %0 = vector.load %arg1[%c0, %c0_0] : memref<8x128xbf16, #tpu.memory_space<vmem>>, vector<8x128xbf16>
    %1 = arith.extf %0 : vector<8x128xbf16> to vector<8x128xf32>
    %c0_1 = arith.constant 0 : index
    %c0_2 = arith.constant 0 : index
    %2 = vector.load %arg2[%c0_1, %c0_2] : memref<32x8xf32, #tpu.memory_space<vmem>>, vector<32x8xf32>
    %cst = arith.constant dense<0.000000e+00> : vector<32x128xf32>
    %3 = tpu.matmul %2, %1, %cst {dimension_numbers = #tpu.dot_dimension_numbers<[1], [0], [0], [1], [0, 0, 1, 1], [], []>} : vector<32x8xf32>, vector<8x128xf32>, vector<32x128xf32> -> vector<32x128xf32>
    %c0_3 = arith.constant 0 : index
    %c0_4 = arith.constant 0 : index
    %4 = vector.load %arg3[%c0_3, %c0_4] : memref<32x1xf32, #tpu.memory_space<vmem>>, vector<32x1xf32>
    %5 = vector.broadcast %4 : vector<32x1xf32> to vector<32x128xf32>
    %6 = arith.addf %3, %5 : vector<32x128xf32>
    %cst_5 = arith.constant 0.000000e+00 : f32
    %7 = vector.broadcast %cst_5 : f32 to vector<32x128xf32>
    %8 = arith.maximumf %6, %7 : vector<32x128xf32>
    %c0_6 = arith.constant 0 : index
    %c0_7 = arith.constant 0 : index
    %9 = vector.load %arg4[%c0_6, %c0_7] : memref<32x32xf32, #tpu.memory_space<vmem>>, vector<32x32xf32>
    %cst_8 = arith.constant dense<0.000000e+00> : vector<32x128xf32>
    %10 = tpu.matmul %9, %8, %cst_8 {dimension_numbers = #tpu.dot_dimension_numbers<[1], [0], [0], [1], [0, 0, 1, 1], [], []>} : vector<32x32xf32>, vector<32x128xf32>, vector<32x128xf32> -> vector<32x128xf32>
    %c0_9 = arith.constant 0 : index
    %c0_10 = arith.constant 0 : index
    %11 = vector.load %arg5[%c0_9, %c0_10] : memref<32x1xf32, #tpu.memory_space<vmem>>, vector<32x1xf32>
    %12 = vector.broadcast %11 : vector<32x1xf32> to vector<32x128xf32>
    %13 = arith.addf %10, %12 : vector<32x128xf32>
    %14 = math.tanh %13 : vector<32x128xf32>
    %c0_11 = arith.constant 0 : index
    %c0_12 = arith.constant 0 : index
    %15 = vector.load %arg6[%c0_11, %c0_12] : memref<4x32xf32, #tpu.memory_space<vmem>>, vector<4x32xf32>
    %cst_13 = arith.constant dense<0.000000e+00> : vector<4x128xf32>
    %16 = tpu.matmul %15, %14, %cst_13 {dimension_numbers = #tpu.dot_dimension_numbers<[1], [0], [0], [1], [0, 0, 1, 1], [], []>} : vector<4x32xf32>, vector<32x128xf32>, vector<4x128xf32> -> vector<4x128xf32>
    %c0_14 = arith.constant 0 : index
    %c0_15 = arith.constant 0 : index
    %17 = vector.load %arg7[%c0_14, %c0_15] : memref<4x1xf32, #tpu.memory_space<vmem>>, vector<4x1xf32>
    %18 = vector.broadcast %17 : vector<4x1xf32> to vector<4x128xf32>
    %19 = arith.addf %16, %18 : vector<4x128xf32>
    %20 = arith.truncf %19 : vector<4x128xf32> to vector<4x128xbf16>
    %c0_16 = arith.constant 0 : index
    %c0_17 = arith.constant 0 : index
    %21 = vector.load %arg8[%c0_16, %c0_17] : memref<4x128xbf16, #tpu.memory_space<vmem>>, vector<4x128xbf16>
    tpu.vector_store %arg8[%c0_16, %c0_17], %20 {strides = array<i32>} : memref<4x128xbf16, #tpu.memory_space<vmem>>, vector<4x128xbf16>,
    return
  }
  func.func @transform_0(%arg0: i32) -> (i32, i32) {
    %c0_i32 = arith.constant 0 : i32
    %c0_i32_0 = arith.constant 0 : i32
    return %c0_i32, %arg0 : i32, i32
  }
  func.func @transform_1(%arg0: i32) -> (i32, i32) {
    %c0_i32 = arith.constant 0 : i32
    %c0_i32_0 = arith.constant 0 : i32
    %c0_i32_1 = arith.constant 0 : i32
    return %c0_i32, %c0_i32_0 : i32, i32
  }
  func.func @transform_2(%arg0: i32) -> (i32, i32) {
    %c0_i32 = arith.constant 0 : i32
    %c0_i32_0 = arith.constant 0 : i32
    %c0_i32_1 = arith.constant 0 : i32
    return %c0_i32, %c0_i32_0 : i32, i32
  }
  func.func @transform_3(%arg0: i32) -> (i32, i32) {
    %c0_i32 = arith.constant 0 : i32
    %c0_i32_0 = arith.constant 0 : i32
    %c0_i32_1 = arith.constant 0 : i32
    return %c0_i32, %c0_i32_0 : i32, i32
  }
  func.func @transform_4(%arg0: i32) -> (i32, i32) {
    %c0_i32 = arith.constant 0 : i32
    %c0_i32_0 = arith.constant 0 : i32
    %c0_i32_1 = arith.constant 0 : i32
    return %c0_i32, %c0_i32_0 : i32, i32
  }
  func.func @transform_5(%arg0: i32) -> (i32, i32) {
    %c0_i32 = arith.constant 0 : i32
    %c0_i32_0 = arith.constant 0 : i32
    %c0_i32_1 = arith.constant 0 : i32
    return %c0_i32, %c0_i32_0 : i32, i32
  }
  func.func @transform_6(%arg0: i32) -> (i32, i32) {
    %c0_i32 = arith.constant 0 : i32
    %c0_i32_0 = arith.constant 0 : i32
    %c0_i32_1 = arith.constant 0 : i32
    return %c0_i32, %c0_i32_0 : i32, i32
  }
  func.func @transform_7(%arg0: i32) -> (i32, i32) {
    %c0_i32 = arith.constant 0 : i32
    %c0_i32_0 = arith.constant 0 : i32
    return %c0_i32, %arg0 : i32, i32
  }
}

</mosaic_0001>

<bundles_post_ra>
// kernel: ode_field_forward.1
= control target key start
LH: loop header
LB: loop body
LE: loop exit
PB: predicated region body
PF: predicated region fallthrough
CT: control target
= control target key end

     0   :  { %v238_v2 = vmov 0   ;;  %vm56_vm0 = vcmask 64512   ;;  %vm130_vm1 = vcmask 261120   ;;  %s348_s0 = inlined_call_operand.vmem [shape: bf16[8,128], index: 0, kind: input, shape index: {}]   ;;  %s349_s1 = inlined_call_operand.vmem [shape: f32[32,8], index: 1, kind: input, shape index: {}]   ;;  %s350_s2 = inlined_call_operand.vmem [shape: f32[32,1], index: 2, kind: input, shape index: {}]   ;;  %s351_s4 = inlined_call_operand.vmem [shape: f32[32,1], index: 4, kind: input, shape index: {}]   ;;  %s352_s6 = inlined_call_operand.vmem [shape: f32[4,1], index: 6, kind: input, shape index: {}]   ;;  %s353_s3 = inlined_call_operand.vmem [shape: f32[32,32], index: 3, kind: input, shape index: {}]   ;;  %s354_s5 = inlined_call_operand.vmem [shape: f32[4,32], index: 5, kind: input, shape index: {}]   ;;  %s355_s7 = inlined_call_operand.vmem [shape: bf16[4,128], index: 7, kind: output, shape index: {}]  }
   0x1   :  { %v26_v0 = vld [vmem:[%s348_s0] sm:$0xf]  ;;  %228 = vset.pattern.permute.xlu1 %v238_v2  ;;  %227 = vset.pattern.permute.xlu0 %v238_v2  ;;  %v31_v4 = vld [vmem:[%s349_s1 + $0x18] sm:$0xff]  ;;  %v33_v6 = vld [vmem:[%s350_s2 + $0x8] sm:$0xff] }
   0x2   :  { %v28_v1 = vld [vmem:[%s349_s1] sm:$0xff]  ;;  %v27_v3 = vunpack.c.l.bf16 %v26_v0  ;;  %v35_v5 = vld [vmem:[%s350_s2 + $0x18] sm:$0xff]  ;;  %229 = vset.pattern.permute.xlu2 %v238_v2  ;;  %43 = vperm.xlu1 %228, %v33_v6   ;;  %v34_v7 = vld [vmem:[%s350_s2 + $0x10] sm:$0xff] }
   0x3   :  { %53 = vperm.xlu0 %227, %v35_v5   ;;  %v32_v8 = vld [vmem:[%s350_s2] sm:$0xff]  ;;  %v29_v9 = vld [vmem:[%s349_s1 + $0x8] sm:$0xff]  ;;  %v30_v12 = vld [vmem:[%s349_s1 + $0x10] sm:$0xff] }
   0x4   :  { %84 = vmatpush.msra.mxu0 %v27_v3  ;;  %221 = vmatpush.msra.mxu2 %v27_v3  ;;  %v107_v10 = vld [vmem:[%s351_s4 + $0x8] sm:$0xff]  ;;  %v106_v11 = vld [vmem:[%s351_s4] sm:$0xff]  ;;  %v109_v14 = vld [vmem:[%s351_s4 + $0x18] sm:$0xff] }
   0x5   :  { %212 = vmatmul.msk.f32.vlgmr.msra.gmra.mxu0 %vm56_vm0, %v28_v1  ;;  %215 = vmatmul.msk.f32.vlgmr.msra.gmra.mxu2 %vm56_vm0, %v31_v4  ;;  %v108_v21 = vld [vmem:[%s351_s4 + $0x10] sm:$0xff]  ;;  %v177_v27 = vld [vmem:[%s352_s6] sm:$0xf]  ;;  %v103_v34 = vld [vmem:[%s353_s3 + $0x8] sm:$0xff] }
   0x6   :  { %127 = vperm.xlu2 %229, %v109_v14   ;;  %v102_v32 = vld [vmem:[%s353_s3] sm:$0xff]  ;;  %v104_v33 = vld [vmem:[%s353_s3 + $0x10] sm:$0xff]  ;;  %v105_v35 = vld [vmem:[%s353_s3 + $0x18] sm:$0xff] }
   0x7   :  { %v176_v51 = vld [vmem:[%s354_s5] sm:$0xf] }
   0xa   :  { %38 = vperm.xlu1 %228, %v32_v8  }
   0xb   :  { %48 = vperm.xlu0 %227, %v34_v7  }
   0xd   :  { %213 = vmatmul.msk.f32.gmra.mxu0 %vm56_vm0, %v29_v9 }
   0xe   :  { %122 = vperm.xlu2 %229, %v108_v21  }
  0x12   :  { %112 = vperm.xlu1 %228, %v106_v11  }
  0x13   :  { %117 = vperm.xlu0 %227, %v107_v10  }
  0x15   :  { %214 = vmatmul.msk.f32.gmra.mxu0 %vm56_vm0, %v30_v12 }
  0x16   :  { %180 = vperm.xlu2 %229, %v177_v27  }
  0x60   :  { %v128_v36 = vpop.permute.xlu2 %127 }
  0x68   :  { %v123_v39 = vpop.permute.xlu2 %122 }
  0x70   :  { %v181_v53 = vpop.permute.xlu2 %180 }
  0x74   :  { %v44_v16 = vpop.permute.xlu1 %43 }
  0x75   :  { %v54_v15 = vpop.permute.xlu0 %53 }
  0x7c   :  { %v39_v23 = vpop.permute.xlu1 %38 }
  0x7d   :  { %v49_v22 = vpop.permute.xlu0 %48 }
  0x82   :  { %v86_v13 = vpop.f32.mrf.mxu0 }
  0x83   :  { %v87_v28 = vadd.f32 %v86_v13, %v39_v23 }
  0x84   :  { %v113_v46 = vpop.permute.xlu1 %112 }
  0x85   :  { %v98_v31 = vmax.f32 %v87_v28, 0.0  ;;  %v118_v44 = vpop.permute.xlu0 %117 }
  0x88   :  { %v95_v17 = vpop.f32.mrf.mxu2 }
  0x89   :  { %v96_v18 = vadd.f32 %v95_v17, %v54_v15 }
  0x8a   :  { %v89_v19 = vpop.f32.mrf.mxu0 }
  0x8b   :  { %v101_v20 = vmax.f32 %v96_v18, 0.0  ;;  %v90_v25 = vadd.f32 %v89_v19, %v44_v16 }
  0x8d   :  { %155 = vmatpush.msra.mxu1 %v101_v20  ;;  %222 = vmatpush.msra.mxu3 %v101_v20  ;;  %v99_v30 = vmax.f32 %v90_v25, 0.0 }
  0x92   :  { %v92_v24 = vpop.f32.mrf.mxu0 }
  0x93   :  { %v93_v26 = vadd.f32 %v92_v24, %v49_v22 }
  0x95   :  { %v100_v29 = vmax.f32 %v93_v26, 0.0 }
  0x97   :  { %156 = vmatpush.msra.mxu1 %v100_v29  ;;  %223 = vmatpush.msra.mxu3 %v100_v29 }
  0x99   :  { %157 = vmatpush.msra.mxu1 %v99_v30  ;;  %224 = vmatpush.msra.mxu3 %v99_v30 }
  0x9b   :  { %158 = vmatpush.msra.mxu1 %v98_v31  ;;  %225 = vmatpush.msra.mxu3 %v98_v31 }
  0x9c   :  { %216 = vmatmul.msk.f32.vlgmr.msra.gmra.mxu1 %vm130_vm1, %v102_v32  ;;  %218 = vmatmul.msk.f32.vlgmr.msra.gmra.mxu3 %vm130_vm1, %v104_v33 }
  0xa4   :  { %217 = vmatmul.msk.f32.gmra.mxu1 %vm130_vm1, %v103_v34  ;;  %219 = vmatmul.msk.f32.gmra.mxu3 %vm130_vm1, %v105_v35 }
 0x119   :  { %v160_v37 = vpop.f32.mrf.mxu1 }
 0x11a   :  { %v161_v47 = vadd.f32 %v160_v37, %v113_v46 }
 0x11f   :  { %v166_v38 = vpop.f32.mrf.mxu3 }
 0x120   :  { %v167_v42 = vadd.f32 %v166_v38, %v123_v39 }
 0x121   :  { %v163_v40 = vpop.f32.mrf.mxu1 }
 0x122   :  { %v164_v45 = vadd.f32 %v163_v40, %v118_v44 }
 0x127   :  { %v169_v41 = vpop.f32.mrf.mxu3 }
 0x128   :  { %v170_v43 = vadd.f32 %v169_v41, %v128_v36 }
 0x12a   :  { %230 = vtanh.f32 %v170_v43 }
 0x12b   :  { %232 = vtanh.f32 %v167_v42 }
 0x12c   :  { %234 = vtanh.f32 %v164_v45 }
 0x12d   :  { %236 = vtanh.f32 %v161_v47 }
 0x130   :  { %v231_v48 = vpop.eup %230 }
 0x131   :  { %198 = vmatpush.msrb.mxu2 %v231_v48  ;;  %v233_v49 = vpop.eup %232 }
 0x132   :  { %v235_v50 = vpop.eup %234 }
 0x133   :  { %199 = vmatpush.msrb.mxu2 %v233_v49  ;;  %v237_v52 = vpop.eup %236 }
 0x135   :  { %200 = vmatpush.msrb.mxu2 %v235_v50 }
 0x137   :  { %201 = vmatpush.msrb.mxu2 %v237_v52 }
 0x138   :  { %220 = vmatmul.msk.f32.vlgmr.msrb.gmra.mxu2 %vm130_vm1, %v176_v51 }
 0x1bb   :  { %v203_v54 = vpop.f32.mrf.mxu2 }
 0x1bc   :  { %v204_v55 = vadd.f32 %v203_v54, %v181_v53 }
 0x1be   :  { %v206_v56 = vpack.c.bf16 %v204_v55, %v204_v55 }
 0x1c0   :  { %207 = vst [vmem:[%s355_s7] sm:$0x3] %v206_v56 }

</bundles_post_ra>
